<compile_context>
chip_gen: v6e
topology: v6e:2x2x1
jax: 0.10.0
libtpu: 0.0.40
codegen_flags: <defaults>
</compile_context>

<pallas_src>
import math
from functools import partial

import jax
import jax.numpy as jnp
from jax.experimental import pallas as pl
from jax.experimental.pallas import tpu as pltpu


def mf_score_kernel(u_ref, i_ref, o_ref, *, dim_p, pairs_per_row):
    # u_ref, i_ref: (R_blk, row_w) packed, lane-dense tiles holding
    #               `pairs_per_row` consecutive pairs' embeddings per row.
    # o_ref:        (R_blk, pairs_per_row) per-pair dot-product scores.
    prod = u_ref[...].astype(jnp.float32) * i_ref[...].astype(jnp.float32)  # VPU
    for g in range(pairs_per_row):  # static unroll; XLU lane reduces (exact f32)
        seg = prod[:, g * dim_p:(g + 1) * dim_p]
        o_ref[:, g:g + 1] = jnp.sum(seg, axis=1, keepdims=True)


def _round_up(x, m):
    return (x + m - 1) // m * m


def _pad_dim(dim):
    """Pad dim so embeddings pack evenly into 128-lane rows."""
    if dim >= 128:
        return _round_up(dim, 128)
    p = 1
    while p < dim:
        p *= 2
    return p  # power of two <= 128, divides 128


@jax.jit
def lovarnet_scores(user_emb, item_emb, user_ids, item_ids):
    """Gather user/item embedding rows and compute per-pair dot products.

    Returns scores of shape (B, 1), float32.
    """
    B = user_ids.shape[0]
    dim = user_emb.shape[1]

    dim_p = _pad_dim(dim)
    ppr = max(1, 128 // dim_p)       # pairs packed per lane-dense row
    row_w = dim_p * ppr              # 128 if dim <= 128, else dim_p

    # Zero-pad the (small) tables, not the gathered slabs; padded columns
    # contribute 0 to every dot product.
    if dim_p != dim:
        user_emb = jnp.pad(user_emb, ((0, 0), (0, dim_p - dim)))
        item_emb = jnp.pad(item_emb, ((0, 0), (0, dim_p - dim)))

    # --- tile sizing (generation-aware VMEM budget) -------------------------
    # Per block row: 2 inputs x 2 pipeline buffers x row_w x 4B
    #                + 2 output buffers x 128 (lane-padded) x 4B.
    # Stay well under v5e's 16 MiB scoped-VMEM default; v6e/v7x have >= 32 MiB
    # scoped (v7x physical VMEM is 64 MiB, also fine).
    vmem_budget = 12 * 1024 * 1024
    bytes_per_block_row = 4 * row_w * 4 + 2 * 128 * 4
    r_cap = max(8, (vmem_budget // bytes_per_block_row) // 8 * 8)

    rows_b = -(-B // ppr)                       # rows needed for the batch
    r_blk = min(r_cap, _round_up(rows_b, 8))
    if r_blk >= rows_b and rows_b >= 16:
        # Prefer >= 2 grid steps so the "parallel" axis can use both
        # TensorCores on v7x.
        r_blk = min(r_blk, _round_up(-(-rows_b // 2), 8))
    rows_pad = _round_up(rows_b, r_blk)
    b_pad = rows_pad * ppr
    grid = rows_pad // r_blk

    # Pad id vectors with a valid index (0); padded lanes are sliced off below.
    uid = jnp.pad(user_ids, (0, b_pad - B))
    iid = jnp.pad(item_ids, (0, b_pad - B))

    # Row gather in XLA (contiguous output); the packed view is a free
    # row-major reshape -- no transpose is materialized.
    u_g = jnp.take(user_emb, uid, axis=0).reshape(rows_pad, row_w)
    i_g = jnp.take(item_emb, iid, axis=0).reshape(rows_pad, row_w)

    in_bytes = u_g.dtype.itemsize
    cost = pl.CostEstimate(
        flops=2 * b_pad * dim_p,
        transcendentals=0,
        bytes_accessed=2 * rows_pad * row_w * in_bytes + rows_pad * ppr * 4,
    )

    scores = pl.pallas_call(
        partial(mf_score_kernel, dim_p=dim_p, pairs_per_row=ppr),
        out_shape=jax.ShapeDtypeStruct((rows_pad, ppr), jnp.float32),
        grid=(grid,),
        in_specs=[
            pl.BlockSpec((r_blk, row_w), lambda b: (b, 0)),
            pl.BlockSpec((r_blk, row_w), lambda b: (b, 0)),
        ],
        out_specs=pl.BlockSpec((r_blk, ppr), lambda b: (b, 0)),
        compiler_params=pltpu.CompilerParams(
            dimension_semantics=("parallel",)),
        cost_estimate=cost,
    )(u_g, i_g)

    # Flatten packed scores back to pair order, drop padding.
    return scores.reshape(-1)[:B].reshape(B, 1)


def xavier_uniform(key, shape, gain):
    fan_in, fan_out = shape[0], shape[1]
    bound = gain * math.sqrt(6.0 / (fan_in + fan_out))
    return jax.random.uniform(key, shape, jnp.float32, -bound, bound)


if __name__ == "__main__":
    n_user, n_item, dim = 32, 64, 32
    batch = 8

    root = jax.random.PRNGKey(0)
    k_user, k_item, k_uid, k_iid = jax.random.split(root, 4)

    relu_gain = math.sqrt(2.0)  # nn.init.calculate_gain('relu')
    user_emb = xavier_uniform(k_user, (n_user, dim), relu_gain)
    item_emb = xavier_uniform(k_item, (n_item, dim), relu_gain)

    user_ids = jax.random.randint(k_uid, (batch,), 0, n_user, dtype=jnp.int32)
    item_ids = jax.random.randint(k_iid, (batch,), 0, n_item, dtype=jnp.int32)

    scores = lovarnet_scores(user_emb, item_emb, user_ids, item_ids)
    scores = jax.block_until_ready(scores)

    # Pure-JAX reference check of the gather + dot-product path.
    ref = jnp.sum(user_emb[user_ids] * item_emb[item_ids],
                  axis=-1, keepdims=True)
    assert scores.shape == (batch, 1)
    assert jnp.allclose(scores, ref, atol=1e-5, rtol=1e-5), "mismatch vs reference"

    print("KERNEL_OK")
</pallas_src>

<mosaic_0001>
module attributes {stable_mosaic.version = 11 : i64} {
  func.func @mf_score_kernel(%arg0: i32, %arg1: memref<8x128xf32, #tpu.memory_space<vmem>>, %arg2: memref<8x128xf32, #tpu.memory_space<vmem>>, %arg3: memref<8x4xf32, #tpu.memory_space<vmem>>) attributes {dimension_semantics = [#tpu.dimension_semantics<parallel>], iteration_bounds = array<i64: 1>, scalar_prefetch = 0 : i64, scratch_operands = 0 : i64, tpu.core_type = #tpu.core_type<tc>, window_params = [{transform_indices = @transform_0, window_bounds = array<i64: 8, 128>}, {transform_indices = @transform_1, window_bounds = array<i64: 8, 128>}, {transform_indices = @transform_2, window_bounds = array<i64: 8, 4>}]} {
    %c0 = arith.constant 0 : index
    %c0_0 = arith.constant 0 : index
    %0 = vector.load %arg1[%c0, %c0_0] : memref<8x128xf32, #tpu.memory_space<vmem>>, vector<8x128xf32>
    %c0_1 = arith.constant 0 : index
    %c0_2 = arith.constant 0 : index
    %1 = vector.load %arg2[%c0_1, %c0_2] : memref<8x128xf32, #tpu.memory_space<vmem>>, vector<8x128xf32>
    %2 = arith.mulf %0, %1 : vector<8x128xf32>
    %3 = vector.extract_strided_slice %2 {offsets = [0, 0], sizes = [8, 32], strides = [1, 1]} : vector<8x128xf32> to vector<8x32xf32>
    %cst = arith.constant dense<0.000000e+00> : vector<8xf32>
    %4 = vector.multi_reduction <add>, %3, %cst [1] : vector<8x32xf32> to vector<8xf32>
    %5 = vector.shape_cast %4 : vector<8xf32> to vector<8x1xf32>
    %c0_3 = arith.constant 0 : index
    %c0_4 = arith.constant 0 : index
    %6 = vector.load %arg3[%c0_3, %c0_4] : memref<8x4xf32, #tpu.memory_space<vmem>>, vector<8x1xf32>
    tpu.vector_store %arg3[%c0_3, %c0_4], %5 {strides = array<i32>} : memref<8x4xf32, #tpu.memory_space<vmem>>, vector<8x1xf32>,
    %7 = vector.extract_strided_slice %2 {offsets = [0, 32], sizes = [8, 32], strides = [1, 1]} : vector<8x128xf32> to vector<8x32xf32>
    %cst_5 = arith.constant dense<0.000000e+00> : vector<8xf32>
    %8 = vector.multi_reduction <add>, %7, %cst_5 [1] : vector<8x32xf32> to vector<8xf32>
    %9 = vector.shape_cast %8 : vector<8xf32> to vector<8x1xf32>
    %c0_6 = arith.constant 0 : index
    %c1 = arith.constant 1 : index
    %10 = vector.load %arg3[%c0_6, %c1] : memref<8x4xf32, #tpu.memory_space<vmem>>, vector<8x1xf32>
    tpu.vector_store %arg3[%c0_6, %c1], %9 {strides = array<i32>} : memref<8x4xf32, #tpu.memory_space<vmem>>, vector<8x1xf32>,
    %11 = vector.extract_strided_slice %2 {offsets = [0, 64], sizes = [8, 32], strides = [1, 1]} : vector<8x128xf32> to vector<8x32xf32>
    %cst_7 = arith.constant dense<0.000000e+00> : vector<8xf32>
    %12 = vector.multi_reduction <add>, %11, %cst_7 [1] : vector<8x32xf32> to vector<8xf32>
    %13 = vector.shape_cast %12 : vector<8xf32> to vector<8x1xf32>
    %c0_8 = arith.constant 0 : index
    %c2 = arith.constant 2 : index
    %14 = vector.load %arg3[%c0_8, %c2] : memref<8x4xf32, #tpu.memory_space<vmem>>, vector<8x1xf32>
    tpu.vector_store %arg3[%c0_8, %c2], %13 {strides = array<i32>} : memref<8x4xf32, #tpu.memory_space<vmem>>, vector<8x1xf32>,
    %15 = vector.extract_strided_slice %2 {offsets = [0, 96], sizes = [8, 32], strides = [1, 1]} : vector<8x128xf32> to vector<8x32xf32>
    %cst_9 = arith.constant dense<0.000000e+00> : vector<8xf32>
    %16 = vector.multi_reduction <add>, %15, %cst_9 [1] : vector<8x32xf32> to vector<8xf32>
    %17 = vector.shape_cast %16 : vector<8xf32> to vector<8x1xf32>
    %c0_10 = arith.constant 0 : index
    %c3 = arith.constant 3 : index
    %18 = vector.load %arg3[%c0_10, %c3] : memref<8x4xf32, #tpu.memory_space<vmem>>, vector<8x1xf32>
    tpu.vector_store %arg3[%c0_10, %c3], %17 {strides = array<i32>} : memref<8x4xf32, #tpu.memory_space<vmem>>, vector<8x1xf32>,
    return
  }
  func.func @transform_0(%arg0: i32) -> (i32, i32) {
    %c0_i32 = arith.constant 0 : i32
    %c0_i32_0 = arith.constant 0 : i32
    return %arg0, %c0_i32 : i32, i32
  }
  func.func @transform_1(%arg0: i32) -> (i32, i32) {
    %c0_i32 = arith.constant 0 : i32
    %c0_i32_0 = arith.constant 0 : i32
    return %arg0, %c0_i32 : i32, i32
  }
  func.func @transform_2(%arg0: i32) -> (i32, i32) {
    %c0_i32 = arith.constant 0 : i32
    %c0_i32_0 = arith.constant 0 : i32
    return %arg0, %c0_i32 : i32, i32
  }
}

</mosaic_0001>

<bundles_post_ra>
// kernel: lovarnet_scores.1
= control target key start
LH: loop header
LB: loop body
LE: loop exit
PB: predicated region body
PF: predicated region fallthrough
CT: control target
= control target key end

     0   :  { %s52_s13 = smov 96   ;;  %s53_s14 = smov 32   ;;  %vm14_vm0 = vcmask 261120   ;;  %vm18_vm1 = vcmask 7168   ;;  %vm27_vm2 = vcmask 15368   ;;  %vm35_vm3 = vcmask 23568   ;;  %s88_s0 = inlined_call_operand.vmem [shape: f32[8,128], index: 0, kind: input, shape index: {}]   ;;  %s89_s1 = inlined_call_operand.vmem [shape: f32[8,128], index: 1, kind: input, shape index: {}]   ;;  %s90_s2 = inlined_call_operand.vmem [shape: f32[8,4], index: 2, kind: output, shape index: {}]  }
   0x1   :  { %v11_v0 = vld [vmem:[%s88_s0] sm:$0xff]  ;;  %s54_s15 = smov 64   ;;  %vm43_vm4 = vcmask 31768  }
   0x2   :  { %v12_v1 = vld [vmem:[%s89_s1] sm:$0xff] }
   0x3   :  { %v13_v2 = vmul.f32 %v12_v1, %v11_v0 }
   0x5   :  { %21 = vrot.lane.b32.xlu0 %v13_v2, %s52_s13  ;;  %37 = vrot.lane.b32.xlu1 %v13_v2, %s53_s14  ;;  %v15_v3 = vsel %vm14_vm0, %v13_v2, 0.0 }
   0x9   :  { %29 = vrot.lane.b32.xlu0 %v13_v2, %s54_s15 }
  0x29   :  { %16 = vadd.xlane.f32.xlu1 %v15_v3 }
  0x77   :  { %v22_v4 = vpop.permute.xlu0 %21  ;;  %v38_v5 = vpop.permute.xlu1 %37 }
  0x78   :  { %v24_v6 = vsel %vm14_vm0, %v22_v4, 0.0  ;;  %v40_v7 = vsel %vm14_vm0, %v38_v5, 0.0 }
  0x79   :  { %25 = vadd.xlane.f32.xlu0 %v24_v6  ;;  %41 = vadd.xlane.f32.xlu1 %v40_v7 }
  0x7b   :  { %v30_v8 = vpop.permute.xlu0 %29 }
  0x7c   :  { %v32_v9 = vsel %vm14_vm0, %v30_v8, 0.0 }
  0x7d   :  { %33 = vadd.xlane.f32.xlu0 %v32_v9 }
  0xb2   :  { %v17_v10 = vpop.xlane.xlu1 %16 }
  0xb3   :  { %19 = vst.msk [vmem:[%s90_s2] sm:$0xff] %vm18_vm1, %v17_v10 }
 0x102   :  { %v26_v11 = vpop.xlane.xlu0 %25  ;;  %v42_v12 = vpop.xlane.xlu1 %41 }
 0x103   :  { %28 = vst.msk [vmem:[%s90_s2] sm:$0xff] %vm27_vm2, %v26_v11 }
 0x106   :  { %v34_v13 = vpop.xlane.xlu0 %33 }
 0x107   :  { %36 = vst.msk [vmem:[%s90_s2] sm:$0xff] %vm35_vm3, %v34_v13 }
 0x108   :  { %44 = vst.msk [vmem:[%s90_s2] sm:$0xff] %vm43_vm4, %v42_v12 }

</bundles_post_ra>
